<compile_context>
chip_gen: v5e
topology: v5e:2x2
jax: 0.10.0
libtpu: 0.0.40
codegen_flags: <defaults>
</compile_context>

<pallas_src>
import numpy as np
import jax
import jax.numpy as jnp
from jax.experimental import pallas as pl
from jax.experimental.pallas import tpu as pltpu


_OFFSETS = [(dy, dx) for dy in (-1, 0, 1) for dx in (-1, 0, 1)]   # k = (dy+1)*3 + (dx+1)


def fold_cfm_weights(s1, s2, p1, p2, gw, gb, group_size):
    """Fold squeeze1/squeeze2/PWC1/PWC2/GWC2 into a (C, 9*C) tap matrix + bias col."""
    s1 = np.asarray(s1, np.float64); s2 = np.asarray(s2, np.float64)
    p1 = np.asarray(p1, np.float64); p2 = np.asarray(p2, np.float64)
    gw = np.asarray(gw, np.float64); gb = np.asarray(gb, np.float64)
    up, C = s1.shape
    low = s2.shape[0]
    out_pg = low // group_size
    in_pg = low // group_size
    a1 = p1 @ s1                    # PWC1 o squeeze1
    a2 = 2.0 * (p2 @ s2)            # PWC2 o squeeze2, applied twice in forward
    m = np.zeros((9, C, C), np.float64)
    for k, (dy, dx) in enumerate(_OFFSETS):
        kh, kw = dy + 1, dx + 1
        g_full = np.zeros((low, low), np.float64)      # block-diagonal grouped tap
        for g in range(group_size):
            g_full[g * out_pg:(g + 1) * out_pg, g * in_pg:(g + 1) * in_pg] = \
                gw[g * out_pg:(g + 1) * out_pg, :, kh, kw]
        m[k, :up, :] = g_full @ s2                     # (GWC2 o squeeze2) tap
    m[4, :up, :] += a1                                 # center tap carries the 1x1 paths
    m[4, up:, :] = a2
    # flatten to (C, 9*C): mflat[:, k*C:(k+1)*C] == m[k]
    mflat = np.transpose(m, (1, 0, 2)).reshape(C, 9 * C)
    bvec = np.concatenate([gb, np.zeros((low,), np.float64)]).reshape(C, 1)
    return mflat.astype(np.float32), bvec.astype(np.float32)


def _border_masks(H, W):
    """(8, H*W) f32 masks, one per non-center 3x3 tap, zeroing out-of-image taps."""
    rows, cols = np.divmod(np.arange(H * W), W)
    masks = []
    for dy, dx in _OFFSETS:
        if dy == 0 and dx == 0:
            continue
        valid = ((rows + dy >= 0) & (rows + dy < H) &
                 (cols + dx >= 0) & (cols + dx < W))
        masks.append(valid.astype(np.float32))
    return np.stack(masks)


def cfm_forward(x, mflat, bvec, masks):
    """x: (B, C, H, W) f32; mflat: (C, 9*C) f32; bvec: (C, 1) f32; masks: (8, H*W) f32."""
    B, C, H, W = x.shape
    N = H * W
    assert N % 128 == 0, "H*W must be a multiple of 128 (lane tile)"
    x2 = x.reshape(B, C, N).astype(jnp.float32)
    inv_n = np.float32(1.0 / N)

    def kernel(m_ref, b_ref, mask_ref, x_ref, o_ref):
        xt = x_ref[...]                                            # (C, N)
        taps = []
        j = 0
        for dy, dx in _OFFSETS:
            if dy == 0 and dx == 0:
                taps.append(xt)                                    # center tap: no shift/mask
            else:
                d = dy * W + dx                                    # flattened shift
                xs = pltpu.roll(xt, (-d) % N, axis=1)              # xs[n] = xt[(n + d) % N]
                xs = xs * mask_ref[pl.ds(j, 1), :]                 # zero wrapped border taps
                taps.append(xs)
                j += 1
        x_stack = jnp.concatenate(taps, axis=0)                    # (9*C, N), sublane stack
        # single MXU matmul replaces all five convolutions
        y = jnp.dot(m_ref[...], x_stack, preferred_element_type=jnp.float32)
        y = y + b_ref[...]                                         # GWC2 bias (y2 rows get 0)
        # fused GAP (spatial mean) + channel softmax + rescale
        g = jnp.sum(y, axis=1, keepdims=True) * inv_n              # (C, 1)
        g = g - jnp.max(g, axis=0, keepdims=True)
        e = jnp.exp(g)
        s = e / jnp.sum(e, axis=0, keepdims=True)
        o_ref[...] = (s * y).astype(o_ref.dtype)

    out = pl.pallas_call(
        kernel,
        out_shape=jax.ShapeDtypeStruct((B, C, N), jnp.float32),
        grid_spec=pltpu.PrefetchScalarGridSpec(
            num_scalar_prefetch=0,
            grid=(B,),
            in_specs=[
                pl.BlockSpec((C, 9 * C), lambda b: (0, 0)),       # resident folded weights
                pl.BlockSpec((C, 1), lambda b: (0, 0)),           # resident bias column
                pl.BlockSpec((8, N), lambda b: (0, 0)),           # resident border masks
                pl.BlockSpec((None, C, N), lambda b: (b, 0, 0)),  # x, batch dim squeezed
            ],
            out_specs=pl.BlockSpec((None, C, N), lambda b: (b, 0, 0)),
        ),
        compiler_params=pltpu.CompilerParams(
            dimension_semantics=("parallel",)),
    )(mflat, bvec, masks, x2)
    return out.reshape(B, C, H, W)


# ---------------------------------------------------------------------------
# Pure numpy reference of the PyTorch CFM forward (for validation).
# ---------------------------------------------------------------------------
def _grouped_conv3x3(z, w, b, groups):
    Bn, cin, H, W = z.shape
    cout = w.shape[0]
    out_pg = cout // groups
    in_pg = cin // groups
    zp = np.pad(z, ((0, 0), (0, 0), (1, 1), (1, 1)))
    out = np.zeros((Bn, cout, H, W), z.dtype)
    for g in range(groups):
        zg = zp[:, g * in_pg:(g + 1) * in_pg]
        wg = w[g * out_pg:(g + 1) * out_pg]
        for kh in range(3):
            for kw in range(3):
                out[:, g * out_pg:(g + 1) * out_pg] += np.einsum(
                    'oi,bihw->bohw', wg[:, :, kh, kw], zg[:, :, kh:kh + H, kw:kw + W])
    return out + b[None, :, None, None]


def cfm_reference(x, s1, s2, p1, p2, gw, gb, group_size):
    x = np.asarray(x, np.float64)
    s1 = np.asarray(s1, np.float64); s2 = np.asarray(s2, np.float64)
    p1 = np.asarray(p1, np.float64); p2 = np.asarray(p2, np.float64)
    gw = np.asarray(gw, np.float64); gb = np.asarray(gb, np.float64)
    up = s1.shape[0]
    x_up = np.einsum('oc,bchw->bohw', s1, x)
    x_dn = np.einsum('oc,bchw->bohw', s2, x)
    y1 = np.einsum('oc,bchw->bohw', p1, x_up) + _grouped_conv3x3(x_dn, gw, gb, group_size)
    y2 = 2.0 * np.einsum('oc,bchw->bohw', p2, x_dn)
    g = np.concatenate([y1.mean(axis=(2, 3), keepdims=True),
                        y2.mean(axis=(2, 3), keepdims=True)], axis=1)
    e = np.exp(g - g.max(axis=1, keepdims=True))
    s = e / e.sum(axis=1, keepdims=True)
    out = np.concatenate([s[:, :up] * y1, s[:, up:] * y2], axis=1)
    return out.astype(np.float32)


if __name__ == "__main__":
    # Small shapes consistent with the module: alpha=1/2, group_size=2,
    # group_kernel_size=3, channels C=8 (up=low=4), spatial 16x16, batch 2.
    B, C, H, W = 2, 8, 16, 16
    alpha, group_size = 0.5, 2
    up = int(alpha * C)
    low = C - up

    key = jax.random.PRNGKey(0)
    ks = jax.random.split(key, 7)
    x = jax.random.normal(ks[0], (B, C, H, W), dtype=jnp.float32)
    s1 = jax.random.normal(ks[1], (up, C), dtype=jnp.float32) / np.sqrt(C)
    s2 = jax.random.normal(ks[2], (low, C), dtype=jnp.float32) / np.sqrt(C)
    p1 = jax.random.normal(ks[3], (up, up), dtype=jnp.float32) / np.sqrt(up)
    p2 = jax.random.normal(ks[4], (low, low), dtype=jnp.float32) / np.sqrt(low)
    gw = jax.random.normal(ks[5], (low, low // group_size, 3, 3),
                           dtype=jnp.float32) / np.sqrt(9 * (low // group_size))
    gb = 0.1 * jax.random.normal(ks[6], (low,), dtype=jnp.float32)

    mflat, bvec = fold_cfm_weights(s1, s2, p1, p2, gw, gb, group_size)
    masks = _border_masks(H, W)

    out = cfm_forward(x, jnp.asarray(mflat), jnp.asarray(bvec), jnp.asarray(masks))
    out = jax.block_until_ready(out)

    ref = cfm_reference(np.asarray(x), np.asarray(s1), np.asarray(s2),
                        np.asarray(p1), np.asarray(p2), np.asarray(gw),
                        np.asarray(gb), group_size)
    np.testing.assert_allclose(np.asarray(out), ref, rtol=1e-4, atol=1e-4)

    print("KERNEL_OK")
</pallas_src>

<mosaic_0001>
module attributes {stable_mosaic.version = 11 : i64} {
  func.func @kernel(%arg0: i32, %arg1: memref<8x72xf32, #tpu.memory_space<vmem>>, %arg2: memref<8x1xf32, #tpu.memory_space<vmem>>, %arg3: memref<8x256xf32, #tpu.memory_space<vmem>>, %arg4: memref<1x8x256xf32, #tpu.memory_space<vmem>>, %arg5: memref<1x8x256xf32, #tpu.memory_space<vmem>>) attributes {dimension_semantics = [#tpu.dimension_semantics<parallel>], iteration_bounds = array<i64: 2>, scalar_prefetch = 0 : i64, scratch_operands = 0 : i64, tpu.core_type = #tpu.core_type<tc>, window_params = [{pipeline_mode = #tpu.pipeline_mode<synchronous>, transform_indices = @transform_0, window_bounds = array<i64: 8, 72>}, {pipeline_mode = #tpu.pipeline_mode<synchronous>, transform_indices = @transform_1, window_bounds = array<i64: 8, 1>}, {pipeline_mode = #tpu.pipeline_mode<synchronous>, transform_indices = @transform_2, window_bounds = array<i64: 8, 256>}, {transform_indices = @transform_3, window_bounds = array<i64: 1, 8, 256>}, {transform_indices = @transform_4, window_bounds = array<i64: 1, 8, 256>}]} {
    %c0 = arith.constant 0 : index
    %c0_0 = arith.constant 0 : index
    %c0_1 = arith.constant 0 : index
    %0 = vector.load %arg4[%c0, %c0_0, %c0_1] : memref<1x8x256xf32, #tpu.memory_space<vmem>>, vector<1x8x256xf32>
    %1 = vector.shape_cast %0 : vector<1x8x256xf32> to vector<8x256xf32>
    %c17_i32 = arith.constant 17 : i32
    %2 = tpu.dynamic_rotate %1 by %c17_i32 dim 1 : vector<8x256xf32>, i32 -> vector<8x256xf32>
    %c0_2 = arith.constant 0 : index
    %c0_3 = arith.constant 0 : index
    %3 = vector.load %arg3[%c0_2, %c0_3] : memref<8x256xf32, #tpu.memory_space<vmem>>, vector<1x256xf32>
    %4 = vector.broadcast %3 : vector<1x256xf32> to vector<8x256xf32>
    %5 = arith.mulf %2, %4 : vector<8x256xf32>
    %c16_i32 = arith.constant 16 : i32
    %6 = tpu.dynamic_rotate %1 by %c16_i32 dim 1 : vector<8x256xf32>, i32 -> vector<8x256xf32>
    %c1 = arith.constant 1 : index
    %c0_4 = arith.constant 0 : index
    %7 = vector.load %arg3[%c1, %c0_4] : memref<8x256xf32, #tpu.memory_space<vmem>>, vector<1x256xf32>
    %8 = vector.broadcast %7 : vector<1x256xf32> to vector<8x256xf32>
    %9 = arith.mulf %6, %8 : vector<8x256xf32>
    %c15_i32 = arith.constant 15 : i32
    %10 = tpu.dynamic_rotate %1 by %c15_i32 dim 1 : vector<8x256xf32>, i32 -> vector<8x256xf32>
    %c2 = arith.constant 2 : index
    %c0_5 = arith.constant 0 : index
    %11 = vector.load %arg3[%c2, %c0_5] : memref<8x256xf32, #tpu.memory_space<vmem>>, vector<1x256xf32>
    %12 = vector.broadcast %11 : vector<1x256xf32> to vector<8x256xf32>
    %13 = arith.mulf %10, %12 : vector<8x256xf32>
    %c1_i32 = arith.constant 1 : i32
    %14 = tpu.dynamic_rotate %1 by %c1_i32 dim 1 : vector<8x256xf32>, i32 -> vector<8x256xf32>
    %c3 = arith.constant 3 : index
    %c0_6 = arith.constant 0 : index
    %15 = vector.load %arg3[%c3, %c0_6] : memref<8x256xf32, #tpu.memory_space<vmem>>, vector<1x256xf32>
    %16 = vector.broadcast %15 : vector<1x256xf32> to vector<8x256xf32>
    %17 = arith.mulf %14, %16 : vector<8x256xf32>
    %c255_i32 = arith.constant 255 : i32
    %18 = tpu.dynamic_rotate %1 by %c255_i32 dim 1 : vector<8x256xf32>, i32 -> vector<8x256xf32>
    %c4 = arith.constant 4 : index
    %c0_7 = arith.constant 0 : index
    %19 = vector.load %arg3[%c4, %c0_7] : memref<8x256xf32, #tpu.memory_space<vmem>>, vector<1x256xf32>
    %20 = vector.broadcast %19 : vector<1x256xf32> to vector<8x256xf32>
    %21 = arith.mulf %18, %20 : vector<8x256xf32>
    %c241_i32 = arith.constant 241 : i32
    %22 = tpu.dynamic_rotate %1 by %c241_i32 dim 1 : vector<8x256xf32>, i32 -> vector<8x256xf32>
    %c5 = arith.constant 5 : index
    %c0_8 = arith.constant 0 : index
    %23 = vector.load %arg3[%c5, %c0_8] : memref<8x256xf32, #tpu.memory_space<vmem>>, vector<1x256xf32>
    %24 = vector.broadcast %23 : vector<1x256xf32> to vector<8x256xf32>
    %25 = arith.mulf %22, %24 : vector<8x256xf32>
    %c240_i32 = arith.constant 240 : i32
    %26 = tpu.dynamic_rotate %1 by %c240_i32 dim 1 : vector<8x256xf32>, i32 -> vector<8x256xf32>
    %c6 = arith.constant 6 : index
    %c0_9 = arith.constant 0 : index
    %27 = vector.load %arg3[%c6, %c0_9] : memref<8x256xf32, #tpu.memory_space<vmem>>, vector<1x256xf32>
    %28 = vector.broadcast %27 : vector<1x256xf32> to vector<8x256xf32>
    %29 = arith.mulf %26, %28 : vector<8x256xf32>
    %c239_i32 = arith.constant 239 : i32
    %30 = tpu.dynamic_rotate %1 by %c239_i32 dim 1 : vector<8x256xf32>, i32 -> vector<8x256xf32>
    %c7 = arith.constant 7 : index
    %c0_10 = arith.constant 0 : index
    %31 = vector.load %arg3[%c7, %c0_10] : memref<8x256xf32, #tpu.memory_space<vmem>>, vector<1x256xf32>
    %32 = vector.broadcast %31 : vector<1x256xf32> to vector<8x256xf32>
    %33 = arith.mulf %30, %32 : vector<8x256xf32>
    %34 = tpu.concatenate %5, %9, %13, %17, %1, %21, %25, %29, %33 in 0 : vector<8x256xf32>, vector<8x256xf32>, vector<8x256xf32>, vector<8x256xf32>, vector<8x256xf32>, vector<8x256xf32>, vector<8x256xf32>, vector<8x256xf32>, vector<8x256xf32> -> vector<72x256xf32>
    %c0_11 = arith.constant 0 : index
    %c0_12 = arith.constant 0 : index
    %35 = vector.load %arg1[%c0_11, %c0_12] : memref<8x72xf32, #tpu.memory_space<vmem>>, vector<8x72xf32>
    %cst = arith.constant dense<0.000000e+00> : vector<8x256xf32>
    %36 = tpu.matmul %35, %34, %cst {dimension_numbers = #tpu.dot_dimension_numbers<[1], [0], [0], [1], [0, 0, 1, 1], [], []>} : vector<8x72xf32>, vector<72x256xf32>, vector<8x256xf32> -> vector<8x256xf32>
    %c0_13 = arith.constant 0 : index
    %c0_14 = arith.constant 0 : index
    %37 = vector.load %arg2[%c0_13, %c0_14] : memref<8x1xf32, #tpu.memory_space<vmem>>, vector<8x1xf32>
    %38 = vector.broadcast %37 : vector<8x1xf32> to vector<8x256xf32>
    %39 = arith.addf %36, %38 : vector<8x256xf32>
    %cst_15 = arith.constant dense<0.000000e+00> : vector<8xf32>
    %40 = vector.multi_reduction <add>, %39, %cst_15 [1] : vector<8x256xf32> to vector<8xf32>
    %41 = vector.shape_cast %40 : vector<8xf32> to vector<8x1xf32>
    %cst_16 = arith.constant 3.906250e-03 : f32
    %42 = vector.broadcast %cst_16 : f32 to vector<8x1xf32>
    %43 = arith.mulf %41, %42 : vector<8x1xf32>
    %cst_17 = arith.constant dense<0xFF800000> : vector<1xf32>
    %44 = vector.multi_reduction <maximumf>, %43, %cst_17 [0] : vector<8x1xf32> to vector<1xf32>
    %45 = vector.shape_cast %44 : vector<1xf32> to vector<1x1xf32>
    %46 = vector.broadcast %45 : vector<1x1xf32> to vector<8x1xf32>
    %47 = arith.subf %43, %46 : vector<8x1xf32>
    %48 = math.exp %47 : vector<8x1xf32>
    %cst_18 = arith.constant dense<0.000000e+00> : vector<1xf32>
    %49 = vector.multi_reduction <add>, %48, %cst_18 [0] : vector<8x1xf32> to vector<1xf32>
    %50 = vector.shape_cast %49 : vector<1xf32> to vector<1x1xf32>
    %51 = vector.broadcast %50 : vector<1x1xf32> to vector<8x1xf32>
    %52 = arith.divf %48, %51 : vector<8x1xf32>
    %53 = vector.broadcast %52 : vector<8x1xf32> to vector<8x256xf32>
    %54 = arith.mulf %53, %39 : vector<8x256xf32>
    %c0_19 = arith.constant 0 : index
    %c0_20 = arith.constant 0 : index
    %c0_21 = arith.constant 0 : index
    %55 = vector.load %arg5[%c0_19, %c0_20, %c0_21] : memref<1x8x256xf32, #tpu.memory_space<vmem>>, vector<1x8x256xf32>
    %56 = vector.shape_cast %55 : vector<1x8x256xf32> to vector<8x256xf32>
    %57 = vector.shape_cast %54 : vector<8x256xf32> to vector<1x8x256xf32>
    tpu.vector_store %arg5[%c0_19, %c0_20, %c0_21], %57 {strides = array<i32>} : memref<1x8x256xf32, #tpu.memory_space<vmem>>, vector<1x8x256xf32>,
    return
  }
  func.func @transform_0(%arg0: i32) -> (i32, i32) {
    %c0_i32 = arith.constant 0 : i32
    %c0_i32_0 = arith.constant 0 : i32
    %c0_i32_1 = arith.constant 0 : i32
    return %c0_i32, %c0_i32_0 : i32, i32
  }
  func.func @transform_1(%arg0: i32) -> (i32, i32) {
    %c0_i32 = arith.constant 0 : i32
    %c0_i32_0 = arith.constant 0 : i32
    %c0_i32_1 = arith.constant 0 : i32
    return %c0_i32, %c0_i32_0 : i32, i32
  }
  func.func @transform_2(%arg0: i32) -> (i32, i32) {
    %c0_i32 = arith.constant 0 : i32
    %c0_i32_0 = arith.constant 0 : i32
    %c0_i32_1 = arith.constant 0 : i32
    return %c0_i32, %c0_i32_0 : i32, i32
  }
  func.func @transform_3(%arg0: i32) -> (i32, i32, i32) {
    %c0_i32 = arith.constant 0 : i32
    %c0_i32_0 = arith.constant 0 : i32
    %c0_i32_1 = arith.constant 0 : i32
    return %arg0, %c0_i32, %c0_i32_0 : i32, i32, i32
  }
  func.func @transform_4(%arg0: i32) -> (i32, i32, i32) {
    %c0_i32 = arith.constant 0 : i32
    %c0_i32_0 = arith.constant 0 : i32
    %c0_i32_1 = arith.constant 0 : i32
    return %arg0, %c0_i32, %c0_i32_0 : i32, i32, i32
  }
}

</mosaic_0001>

<bundles_post_ra>
// kernel: tpu_custom_call.1
= control target key start
LH: loop header
LB: loop body
LE: loop exit
PB: predicated region body
PF: predicated region fallthrough
CT: control target
= control target key end

     0   :  { %9 = vsyncpa [#allocation3], 0  ;;  %s993_s0 = inlined_call_operand.vmem [shape: f32[8,72], index: 0, kind: input, shape index: {}]   ;;  %s994_s1 = inlined_call_operand.vmem [shape: f32[8,1], index: 1, kind: input, shape index: {}]   ;;  %s995_s2 = inlined_call_operand.hbm [shape: f32[8,256], index: 2, kind: input, shape index: {}]   ;;  %s996_s3 = inlined_call_operand.hbm [shape: f32[2,8,256], index: 3, kind: input, shape index: {}]   ;;  %s997_s4 = inlined_call_operand.hbm [shape: f32[2,8,256], index: 4, kind: output, shape index: {}]  }
   0x1   :  { %10 = vsyncpa [#allocation6], 0 }
   0x2   :  { %12 = vsyncpa [#allocation6 + $0x1], 0 }
   0x3   :  { %13 = vsyncpa [#allocation4], 0 }
   0x4   :  { %15 = vsyncpa [#allocation4 + $0x1], 0  ;;  %s809_s15 = smov 0   ;;  %s811_s16 = smov 0  }
   0x5   :  { %s813_s17 = smov 0   ;;  %s815_s18 = smov 0  }
   0x6 LB: > { %s830_s19 = sadd.s32 4294967295, %s772_s18   ;;  %s550_s20 = sadd.s32 4294967294, %s772_s18   ;;  %s772_s18 = sphi %s815_s18, %s1007_s18   ;;  %s768_s17 = sphi %s813_s17, %s1006_s17   ;;  %s764_s16 = sphi %s811_s16, %s1005_s16   ;;  %s760_s15 = sphi %s809_s15, %s1004_s15  }
   0x7   : > { %p104_p0 = scmp.ne.s32.totalorder %s764_s16, %s760_s15  ;;  %p105_p1 = scmp.eq.s32.totalorder %s830_s19, 0 }
   0x8   : > { %p128_p2 = scmp.eq.s32.totalorder %s830_s19, 1  ;;  %p134_p3 = scmp.eq.s32.totalorder %s550_s20, 1 }
   0x9   : > { %p839_p4 = por %p105_p1, %p104_p0  ;;  %p551_p5 = scmp.ge.s32.totalorder %s772_s18, 1 }
   0xa   : > { %p844_p6 = por %p134_p3, %p104_p0  ;;  %p141_p7 = scmp.lt.s32.totalorder %s772_s18, 3 }
   0xb   : > { %s159_s25 = sshll.u32 %s995_s2, 4  ;;  %s774_s27 = smov [#allocation2]   ;;  %s160_s25 = int_to_ptr.hbm [resolvable:$true] %s159_s25 }
   0xc   : > { %p852_p8 = pnand %p551_p5, %p141_p7  ;;  %s161_s28 = sshll.u32 %s774_s27, 4  ;;  %s162_s28 = int_to_ptr.vmem [resolvable:$true] %s161_s28 }
   0xd   : > { %s862_s29 = sadd.s32 1, %s772_s18   ;;  %s91_s30 = sadd.s32 1, %s768_s17 }
   0xe   : > { %p578_p10 = pneg %p852_p8  ;;  %s88_s5 = ssub.s32 %s772_s18, %s862_s29 }
   0xf   : > { %p89_p12 = scmp.eq.s32.totalorder %s88_s5, 0  ;;  %p98_p13 = scmp.ne.s32.totalorder %s768_s17, %s764_s16 }
  0x10   : > { %p579_p11 = pnand %p578_p10, %p105_p1  ;;  %p99_p0 = scmp.eq.s32.totalorder %s772_s18, 0 }
  0x11   : > { %s871_s6 = scalar_select %p89_p12, %s768_s17, %s91_s30  }
  0x12   : > { %581 = dma.hbm_to_vmem [thread:$0]  (!%p579_p11), %s160_s25, 256, %s162_s28, [#allocation3]  }
  0x13   : > { %p875_p3 = por %p128_p2, %p98_p13  ;;  %p591_p5 = scmp.lt.s32.totalorder %s772_s18, 2 }
  0x14   : > { %s172_s8 = sand.u32 1, %s768_s17   ;;  %s568_s9 = sshll.u32 %s772_s18, 4 }
  0x15   : > { %p100_p7 = por %p99_p0, %p98_p13  ;;  %s554_s10 = sshll.u32 %s172_s8, 4 }
  0x16   : > { %s181_s13 = scalar_lea.hbm %s996_s3, %s568_s9  ;;  %s176_s20 = scalar_lea.vmem [#allocation5], %s554_s10 }
  0x17   : > { %s183_s14 = sshll.u32 %s181_s13, 4  ;;  %s185_s23 = sshll.u32 %s176_s20, 4  ;;  %s184_s14 = int_to_ptr.hbm [resolvable:$true] %s183_s14  ;;  %s186_s23 = int_to_ptr.vmem [resolvable:$true] %s185_s23 }
  0x18   : > { %p885_p10 = pnand %p591_p5, %p100_p7  ;;  %s173_s25 = scalar_lea.sflag [#allocation6], %s172_s8 }
  0x19   : > { %s672_s27 = sshra.s32 %s184_s14, 4  ;;  %s679_s9 = scalar_lea.hbm %s996_s3, 32  ;;  %s673_s27 = int_to_ptr.hbm [resolvable:$true] %s672_s27 }
  0x1a   : > { %s674_s28 = scalar_lea.hbm %s673_s27, 16  ;;  %p676_p11 = pneg %p885_p10 }
  0x1b   : > { %p675_p2 = scmp.ne.s32.totalorder %s673_s27, %s674_s28  ;;  %p680_p0 = scmp.lt.s32.totalorder %s673_s27, %s996_s3 }
  0x1c   : > { %p681_p5 = scmp.lt.s32.totalorder %s679_s9, %s674_s28 }
  0x1d   : > { %p677_p12 = pnand %p676_p11, %p675_p2 }
  0x1e   : > { %p682_p7 = por %p681_p5, %p680_p0 }
  0x1f   : > { %p678_p13 = pneg %p677_p12 }
  0x21   : > { %p683_p9 = pnand %p682_p7, %p678_p13 }
  0x23   : > { %686 = shalt.err (!%p683_p9)
}
  0x24   : > { %585 = dma.hbm_to_vmem [thread:$0]  (!%p885_p10), %s184_s14, 256, %s186_s23, %s173_s25  }
  0x25   : > { %194 = sbr.rel (%p852_p8) target bundleno = 515 (0x203), region = 36 }
  0x2a   : > { %747 = dma.done.wait (%p105_p1), [#allocation3], 256  }
  0x2b   : > { %749 = vsyncadd (%p105_p1), [#allocation3], 4294967040  ;;  %s906_s8 = sand.u32 1, %s764_s16  }
  0x2c   : > { %s559_s12 = sshll.u32 %s906_s8, 4  ;;  %s202_s13 = scalar_lea.sflag [#allocation6], %s906_s8 }
  0x2d   : > { %s205_s14 = scalar_lea.vmem [#allocation5], %s559_s12 }
  0x2e   : > { %751 = dma.done.wait (%p839_p4), %s202_s13, 256  }
  0x2f   : > { %753 = vsyncadd (%p839_p4), %s202_s13, 4294967040  ;;  %v916_v0 = vld [vmem:[%s205_s14] sm:$0xff]  ;;  %s775_s26 = smov 112   ;;  %s776_s20 = smov 111   ;;  %v921_v1 = vld [vmem:[%s205_s14 + $0x8] sm:$0xff]  ;;  %v237_v3 = vlaneseq  ;;  %v783_v36 = vmov 0  }
  0x30   : > { %330 = vrot.lane.b32.xlu1 %v916_v0, %s775_s26  ;;  %346 = vrot.lane.b32.xlu0 %v916_v0, %s776_s20  ;;  %s777_s23 = smov 113   ;;  %s778_s21 = smov 127   ;;  %v354_v7 = vld [vmem:[#allocation2 + $0x7] ss:$8 sm:$0x3]  ;;  %vm369_vm8 = vcmask 588800  }
  0x31   : > { %314 = vrot.lane.b32.xlu2 %v916_v0, %s777_s23  ;;  %s779_s24 = smov 1   ;;  %s780_s25 = smov 15   ;;  %v936_v6 = vand.u32 127, %v237_v3  ;;  %v338_v9 = vld [vmem:[#allocation2 + $0x6] ss:$8 sm:$0x3]  ;;  %636 = vset.pattern.permute.xlu1 %v783_v36 }
  0x32   : > { %s781_s27 = smov 16   ;;  %s782_s28 = smov 17   ;;  %v356_v10 = vperm.slane %v354_v7, 0  ;;  %v357_v11 = vperm.slane %v354_v7, 1  ;;  %v340_v15 = vperm.slane %v338_v9, 0  ;;  %v341_v16 = vperm.slane %v338_v9, 1  ;;  %637 = vset.pattern.permute.xlu0 %v783_v36 }
  0x33   : > { %vm334_vm0 = vcmp.lt.s32.totalorder %v936_v6, 112  ;;  %vm350_vm1 = vcmp.lt.s32.totalorder %v936_v6, 111  ;;  %v322_v12 = vld [vmem:[#allocation2 + $0x5] ss:$8 sm:$0x3]  ;;  %vm318_vm2 = vcmp.lt.s32.totalorder %v936_v6, 113 }
  0x34   : > { %v324_v23 = vperm.slane %v322_v12, 0  ;;  %v325_v24 = vperm.slane %v322_v12, 1  ;;  %v306_v27 = vld [vmem:[#allocation2 + $0x4] ss:$8 sm:$0x3]  ;;  %vm302_vm3 = vcmp.lt.s32.totalorder %v936_v6, 127 }
  0x35   : > { %v308_v33 = vperm.slane %v306_v27, 0  ;;  %v309_v34 = vperm.slane %v306_v27, 1  ;;  %v363_v35 = vld [vmem:[%s994_s1] sm:$0xff]  ;;  %vm286_vm4 = vcmp.lt.s32.totalorder %v936_v6, 1  ;;  %vm270_vm5 = vcmp.lt.s32.totalorder %v936_v6, 15  ;;  %s569_s11 = sshll.u32 %s830_s19, 4 }
  0x36   : > { %v290_v43 = vld [vmem:[#allocation2 + $0x3] ss:$8 sm:$0x3]  ;;  %v274_v44 = vld [vmem:[#allocation2 + $0x2] ss:$8 sm:$0x3] }
  0x37   : > { %v292_v45 = vperm.slane %v290_v43, 0  ;;  %v293_v46 = vperm.slane %v290_v43, 1  ;;  %v276_v48 = vperm.slane %v274_v44, 0  ;;  %v277_v49 = vperm.slane %v274_v44, 1  ;;  %s452_s19 = scalar_lea.sflag [#allocation4], %s906_s8 }
  0x38   : > { %332 = vrot.lane.b32.xlu1 %v921_v1, %s775_s26  ;;  %348 = vrot.lane.b32.xlu0 %v921_v1, %s776_s20  ;;  %v258_v60 = vld [vmem:[#allocation2 + $0x1] ss:$8 sm:$0x3]  ;;  %vm254_vm6 = vcmp.lt.s32.totalorder %v936_v6, 16  ;;  %vm239_vm7 = vcmp.lt.s32.totalorder %v936_v6, 17  ;;  %s463_s26 = scalar_lea.hbm %s997_s4, %s569_s11  ;;  %s230_s20 = scalar_lea.vmem [#allocation7], %s559_s12 }
  0x39   : > { %316 = vrot.lane.b32.xlu2 %v921_v1, %s777_s23  ;;  %v260_v61 = vperm.slane %v258_v60, 0  ;;  %v261_v62 = vperm.slane %v258_v60, 1  ;;  %s465_s23 = sshll.u32 %s230_s20, 4  ;;  %s722_s12 = scalar_lea.hbm %s997_s4, 32  ;;  %s466_s23 = int_to_ptr.vmem [resolvable:$true] %s465_s23 }
  0x40   : > { %300 = vrot.lane.b32.xlu1 %v921_v1, %s778_s21  ;;  %298 = vrot.lane.b32.xlu0 %v916_v0, %s778_s21  ;;  %s467_s21 = sshll.u32 %s463_s26, 4  ;;  %s468_s21 = int_to_ptr.hbm [resolvable:$true] %s467_s21 }
  0x41   : > { %282 = vrot.lane.b32.xlu2 %v916_v0, %s779_s24 }
  0x48   : > { %266 = vrot.lane.b32.xlu1 %v916_v0, %s780_s25  ;;  %284 = vrot.lane.b32.xlu0 %v921_v1, %s779_s24  ;;  %s716_s24 = sshra.s32 %s468_s21, 4  ;;  %s717_s24 = int_to_ptr.hbm [resolvable:$true] %s716_s24 }
  0x49   : > { %268 = vrot.lane.b32.xlu2 %v921_v1, %s780_s25  ;;  %s718_s25 = scalar_lea.hbm %s717_s24, 16  ;;  %p723_p9 = scmp.lt.s32.totalorder %s717_s24, %s997_s4 }
  0x4a   : > { %p719_p1 = scmp.ne.s32.totalorder %s717_s24, %s718_s25  ;;  %p724_p10 = scmp.lt.s32.totalorder %s722_s12, %s718_s25 }
  0x4c   : > { %p720_p4 = pnand %p719_p1, %p875_p3  ;;  %p725_p2 = por %p724_p10, %p723_p9 }
  0x4e   : > { %p721_p8 = pneg %p720_p4 }
  0x50   : > { %252 = vrot.lane.b32.xlu1 %v921_v1, %s781_s27  ;;  %250 = vrot.lane.b32.xlu0 %v916_v0, %s781_s27  ;;  %p726_p11 = pnand %p725_p2, %p721_p8 }
  0x51   : > { %233 = vrot.lane.b32.xlu2 %v916_v0, %s782_s28 }
  0x58   : > { %235 = vrot.lane.b32.xlu0 %v921_v1, %s782_s28  ;;  %366 = vperm.xlu1 %636, %v363_v35  }
  0x8b   : > { %v315_v2 = vpop.permute.xlu2 %314 }
  0x93   : > { %v317_v8 = vpop.permute.xlu2 %316 }
  0x94   : > { %v319_v25 = vsel %vm318_vm2, %v315_v2, %v317_v8  ;;  %v320_v26 = vsel %vm318_vm2, %v317_v8, %v315_v2 }
  0x95   : > { %v328_v31 = vmul.f32 %v324_v23, %v319_v25  ;;  %v329_v32 = vmul.f32 %v325_v24, %v320_v26 }
  0x9b   : > { %v283_v30 = vpop.permute.xlu2 %282 }
  0xa2   : > { %v331_v4 = vpop.permute.xlu1 %330  ;;  %v347_v5 = vpop.permute.xlu0 %346 }
  0xa3   : > { %v269_v47 = vpop.permute.xlu2 %268 }
  0xaa   : > { %v333_v13 = vpop.permute.xlu1 %332  ;;  %v349_v14 = vpop.permute.xlu0 %348 }
  0xab   : > { %v335_v17 = vsel %vm334_vm0, %v331_v4, %v333_v13  ;;  %v336_v18 = vsel %vm334_vm0, %v333_v13, %v331_v4  ;;  %v351_v19 = vsel %vm350_vm1, %v347_v5, %v349_v14  ;;  %v352_v20 = vsel %vm350_vm1, %v349_v14, %v347_v5  ;;  %v242_v5 = vld [vmem:[#allocation2] ss:$8 sm:$0x3]  ;;  %v234_v7 = vpop.permute.xlu2 %233 }
  0xac   : > { %v360_v21 = vmul.f32 %v356_v10, %v351_v19  ;;  %v361_v22 = vmul.f32 %v357_v11, %v352_v20  ;;  %v344_v28 = vmul.f32 %v340_v15, %v335_v17  ;;  %v345_v29 = vmul.f32 %v341_v16, %v336_v18  ;;  %v362_v15 = vld [vmem:[%s993_s0] sm:$0xff] }
  0xad   : > { %v244_v8 = vperm.slane %v242_v5, 0  ;;  %v245_v9 = vperm.slane %v242_v5, 1 }
  0xae   : > { %380 = vmatpush.msra.mxu0 %v360_v21  ;;  %400 = vmatpush.msra.mxu1 %v361_v22 }
  0xb0   : > { %381 = vmatpush.msra.mxu0 %v344_v28  ;;  %401 = vmatpush.msra.mxu1 %v345_v29 }
  0xb2   : > { %v301_v37 = vpop.permute.xlu1 %300  ;;  %382 = vmatpush.msra.mxu0 %v328_v31  ;;  %402 = vmatpush.msra.mxu1 %v329_v32  ;;  %v299_v38 = vpop.permute.xlu0 %298 }
  0xb3   : > { %v303_v39 = vsel %vm302_vm3, %v299_v38, %v301_v37  ;;  %v304_v40 = vsel %vm302_vm3, %v301_v37, %v299_v38 }
  0xb4   : > { %v312_v41 = vmul.f32 %v308_v33, %v303_v39  ;;  %v313_v42 = vmul.f32 %v309_v34, %v304_v40 }
  0xb6   : > { %383 = vmatpush.msra.mxu0 %v312_v41  ;;  %403 = vmatpush.msra.mxu1 %v313_v42 }
  0xb8   : > { %384 = vmatpush.msra.mxu0 %v916_v0  ;;  %404 = vmatpush.msra.mxu1 %v921_v1 }
  0xba   : > { %v267_v50 = vpop.permute.xlu1 %266  ;;  %v285_v51 = vpop.permute.xlu0 %284 }
  0xbb   : > { %v287_v52 = vsel %vm286_vm4, %v283_v30, %v285_v51  ;;  %v288_v53 = vsel %vm286_vm4, %v285_v51, %v283_v30  ;;  %v271_v54 = vsel %vm270_vm5, %v267_v50, %v269_v47  ;;  %v272_v55 = vsel %vm270_vm5, %v269_v47, %v267_v50 }
  0xbc   : > { %v296_v56 = vmul.f32 %v292_v45, %v288_v53  ;;  %v297_v57 = vmul.f32 %v293_v46, %v287_v52  ;;  %v280_v58 = vmul.f32 %v276_v48, %v272_v55  ;;  %v281_v59 = vmul.f32 %v277_v49, %v271_v54 }
  0xbe   : > { %385 = vmatpush.msra.mxu0 %v296_v56  ;;  %405 = vmatpush.msra.mxu1 %v297_v57 }
  0xc0   : > { %386 = vmatpush.msra.mxu0 %v280_v58  ;;  %406 = vmatpush.msra.mxu1 %v281_v59 }
  0xc2   : > { %v253_v63 = vpop.permute.xlu1 %252  ;;  %v251_v0 = vpop.permute.xlu0 %250 }
  0xc3   : > { %v255_v1 = vsel %vm254_vm6, %v251_v0, %v253_v63  ;;  %v256_v2 = vsel %vm254_vm6, %v253_v63, %v251_v0 }
  0xc4   : > { %v264_v3 = vmul.f32 %v260_v61, %v256_v2  ;;  %v265_v4 = vmul.f32 %v261_v62, %v255_v1 }
  0xc6   : > { %387 = vmatpush.msra.mxu0 %v264_v3  ;;  %407 = vmatpush.msra.mxu1 %v265_v4 }
  0xca   : > { %v236_v10 = vpop.permute.xlu0 %235  ;;  %v367_v16 = vpop.permute.xlu1 %366 }
  0xcb   : > { %v240_v11 = vsel %vm239_vm7, %v234_v7, %v236_v10  ;;  %v241_v12 = vsel %vm239_vm7, %v236_v10, %v234_v7 }
  0xcc   : > { %v248_v13 = vmul.f32 %v244_v8, %v241_v12  ;;  %v249_v14 = vmul.f32 %v245_v9, %v240_v11 }
  0xce   : > { %388 = vmatpush.msra.mxu0 %v248_v13  ;;  %408 = vmatpush.msra.mxu1 %v249_v14 }
  0xcf   : > { %561 = vmatmul.msk.f32.vlgmr.msra.gmra.mxu0 %vm369_vm8, %v362_v15  ;;  %562 = vmatmul.msk.f32.vlgmr.msra.gmra.mxu1 %vm369_vm8, %v362_v15 }
 0x14c   : > { %v390_v17 = vpop.f32.mrf.mxu0  ;;  %v410_v18 = vpop.f32.mrf.mxu1 }
 0x14d   : > { %v391_v6 = vadd.f32 %v390_v17, %v367_v16  ;;  %v411_v19 = vadd.f32 %v410_v18, %v367_v16 }
 0x14f   : > { %v413_v20 = vadd.f32 %v411_v19, %v391_v6 }
 0x151   : > { %414 = vadd.xlane.f32.xlu2 %v413_v20 }
 0x1c4   : > { %v415_v21 = vpop.xlane.xlu2 %414 }
 0x1c5   : > { %v416_v22 = vmul.f32 0.00390625, %v415_v21 }
 0x1c7   : > { %v417_v23 = vrot.slane %v416_v22, 4 }
 0x1c9   : > { %v418_v24 = vmax.f32 %v416_v22, %v417_v23 }
 0x1cb   : > { %v419_v25 = vrot.slane %v418_v24, 2 }
 0x1cd   : > { %v420_v26 = vmax.f32 %v418_v24, %v419_v25 }
 0x1cf   : > { %v421_v27 = vrot.slane %v420_v26, 1 }
 0x1d1   : > { %v422_v28 = vmax.f32 %v420_v26, %v421_v27 }
 0x1d3   : > { %v423_v29 = vsub.f32 %v416_v22, %v422_v28 }
 0x1d5   : > { %v424_v30 = vmul.f32 1.442695, %v423_v29 }
 0x1d7   : > { %638 = vpow2.f32 %v424_v30 }
 0x1dd   : > { %v639_v31 = vpop.eup %638 }
 0x1de   : > { %v426_v32 = vrot.slane %v639_v31, 4 }
 0x1e0   : > { %v427_v33 = vadd.f32 %v639_v31, %v426_v32 }
 0x1e2   : > { %v428_v34 = vrot.slane %v427_v33, 2 }
 0x1e4   : > { %v429_v35 = vadd.f32 %v428_v34, %v427_v33 }
 0x1e6   : > { %v430_v36 = vrot.slane %v429_v35, 1 }
 0x1e8   : > { %v431_v37 = vadd.f32 %v430_v36, %v429_v35 }
 0x1ea   : > { %640 = vrcp.f32 %v431_v37  ;;  %v443_v41 = vand.u32 2147483648, %v431_v37  ;;  %v441_v43 = vand.u32 2147483647, %v431_v37  ;;  %vm437_vm10 = vweird.f32 %v431_v37 }
 0x1ec   : > { %v444_v45 = vor.u32 1.1754944e-38, %v443_v41  ;;  %vm442_vm12 = vcmp.eq.f32.partialorder %v441_v43, 8.507059e+37 }
 0x1f0   : > { %v641_v38 = vpop.eup %640 }
 0x1f1   : > { %v433_v39 = vmul.f32 %v641_v38, %v431_v37  ;;  %vm438_vm9 = vweird.f32 %v641_v38 }
 0x1f2   : > { %vm439_vm11 = vmor %vm437_vm10, %vm438_vm9 }
 0x1f3   : > { %v434_v40 = vsub.f32 1.0, %v433_v39 }
 0x1f5   : > { %v435_v42 = vmul.f32 %v641_v38, %v434_v40 }
 0x1f7   : > { %v436_v44 = vadd.f32 %v641_v38, %v435_v42 }
 0x1f9   : > { %v440_v46 = vsel %vm439_vm11, %v641_v38, %v436_v44 }
 0x1fa   : > { %v445_v47 = vsel %vm442_vm12, %v444_v45, %v440_v46 }
 0x1fb   : > { %v446_v48 = vmul.f32 %v639_v31, %v445_v47 }
 0x1fd   : > { %v447_v49 = vmul.f32 %v446_v48, %v391_v6  ;;  %v448_v50 = vmul.f32 %v446_v48, %v411_v19 }
 0x1ff   : > { %449 = vst [vmem:[%s230_s20] sm:$0xff] %v447_v49 }
 0x200   : > { %450 = vst [vmem:[%s230_s20 + $0x8] sm:$0xff] %v448_v50 }
 0x201   : > { %729 = shalt.err (!%p726_p11)
}
 0x202   : > { %576 = dma.vmem_to_hbm [thread:$0]  (%p875_p3), %s466_s23, 256, %s468_s21, %s452_s19  }
 0x203 PF: > { %s479_s8 = sand.u32 1, %s760_s15   ;;  %p1003_p12 = scmp.ge.s32.totalorder %s772_s18, 2 }
 0x204   : > { %s480_s9 = scalar_lea.sflag [#allocation4], %s479_s8 }
 0x205   : > { %p587_p13 = pnand %p1003_p12, %p844_p6 }
 0x207   : > { %p588_p0 = pneg %p587_p13 }
 0x209   : > { %755 = dma.done.wait (%p588_p0), %s480_s9, 256  }
 0x20a   : > { %757 = vsyncadd (%p588_p0), %s480_s9, 4294967040  ;;  %p18_p5 = scmp.ge.s32.totalorder %s862_s29, 4   ;;  %s1004_s15 = smov %s764_s16 }
 0x20b   : > { %s1005_s16 = smov %s768_s17  ;;  %s1006_s17 = smov %s871_s6 }
 0x20c   : > { %s1007_s18 = smov %s862_s29  ;;  %20 = sbr.rel (!%p18_p5) target bundleno = 6 (0x6), region = 93 }
 0x211   :  { %486 = vsyncpa [#allocation3], 1 }
 0x212   :  { %488 = vsyncpa [#allocation3 + $0x1], 1 }
 0x213   :  { %489 = vsyncpa [#allocation6], 1 }
 0x214   :  { %491 = vsyncpa [#allocation6 + $0x1], 1 }
 0x215   :  { %492 = vsyncpa [#allocation4], 1 }
 0x216   :  { %494 = vsyncpa [#allocation4 + $0x1], 1 }

</bundles_post_ra>
